<compile_context>
chip_gen: v6e
topology: v6e:2x2x1
jax: 0.10.0
libtpu: 0.0.40
codegen_flags: <defaults>
</compile_context>

<pallas_src>
import functools

import jax
import jax.numpy as jnp
from jax import lax
from jax.experimental import pallas as pl
from jax.experimental.pallas import tpu as pltpu

LN_EPS = 1e-5
LANE = 128
SUBLANE = 8


def _round_up(x, m):
    return (x + m - 1) // m * m


# ----------------------------------------------------------------------------
# Fused kernel: (Linear -> LayerNorm -> Tanh) * num_hidden  ->  Linear
# ----------------------------------------------------------------------------
def _fused_mlp_kernel(x_ref, wh_ref, bgb_ref, wf_ref, bf_ref, o_ref, *,
                      num_hidden, hidden_width):
    # x_ref:   (tm, P)        padded input rows (lanes >= in_channels are 0)
    # wh_ref:  (Lh, P, P)     stacked hidden weights, zero-padded
    # bgb_ref: (Lh, 8, P)     row0=bias, row1=gamma, row2=beta (zero-padded lanes)
    # wf_ref:  (P, P)         final weight, zero-padded
    # bf_ref:  (1, P)         final bias, zero-padded
    # o_ref:   (tm, P)        padded output
    P = x_ref.shape[-1]
    h = x_ref[...]  # activation lives in vregs/VMEM across all layers

    # Lane mask for the true hidden width (padded lanes excluded from LN stats).
    lane_idx = lax.broadcasted_iota(jnp.int32, (1, P), 1)
    mask = (lane_idx < hidden_width).astype(jnp.float32)
    inv_h = 1.0 / float(hidden_width)

    # num_hidden is small and static -> unrolled Python loop.
    for i in range(num_hidden):
        w = wh_ref[i]                               # (P, P)
        bgb = bgb_ref[i]                            # (8, P)
        y = jnp.dot(h, w, preferred_element_type=jnp.float32) + bgb[0:1, :]
        # LayerNorm over the true hidden width.  Padded lanes of y are exactly 0
        # (zero weight columns + zero bias), so the plain sum equals the masked sum.
        mean = jnp.sum(y, axis=-1, keepdims=True) * inv_h
        d = y - mean
        var = jnp.sum(d * d * mask, axis=-1, keepdims=True) * inv_h
        y_hat = d * lax.rsqrt(var + LN_EPS) * bgb[1:2, :] + bgb[2:3, :]
        # gamma/beta are 0 in padded lanes -> y_hat padded lanes are 0 -> tanh(0)=0,
        # so the padding stays clean for the next layer's matmul.
        h = jnp.tanh(y_hat)

    y = jnp.dot(h, wf_ref[...], preferred_element_type=jnp.float32) + bf_ref[...]
    o_ref[...] = y.astype(o_ref.dtype)


# ----------------------------------------------------------------------------
# Parameter packing (pad every feature dim to a multiple of 128 lanes)
# ----------------------------------------------------------------------------
def pack_params(params, in_channels, out_channels, hidden_channels):
    P = _round_up(max(in_channels, hidden_channels, out_channels), LANE)
    hidden = [p for p in params if p[0] == "hidden"]
    Lh = len(hidden)
    assert Lh >= 1, "num_layers must be >= 2"

    wh = jnp.zeros((Lh, P, P), jnp.float32)
    bgb = jnp.zeros((Lh, SUBLANE, P), jnp.float32)
    for i, (_, w, b, g, beta) in enumerate(hidden):
        wh = wh.at[i, :w.shape[0], :w.shape[1]].set(w)
        bgb = bgb.at[i, 0, :b.shape[0]].set(b)
        bgb = bgb.at[i, 1, :g.shape[0]].set(g)
        bgb = bgb.at[i, 2, :beta.shape[0]].set(beta)

    _, wf_raw, bf_raw = params[-1]
    wf = jnp.zeros((P, P), jnp.float32)
    wf = wf.at[:wf_raw.shape[0], :wf_raw.shape[1]].set(wf_raw)
    bf = jnp.zeros((1, P), jnp.float32)
    bf = bf.at[0, :bf_raw.shape[0]].set(bf_raw)
    return wh, bgb, wf, bf


# ----------------------------------------------------------------------------
# Forward (single fused pallas_call)
# ----------------------------------------------------------------------------
@functools.partial(jax.jit, static_argnames=("in_channels", "out_channels",
                                             "hidden_channels", "num_hidden"))
def custom_mlp_forward(x, packed, *, in_channels, out_channels,
                       hidden_channels, num_hidden):
    wh, bgb, wf, bf = packed
    B = x.shape[0]
    P = wh.shape[-1]

    # Pick a batch tile: small batches -> one block; big batches -> 256-row tiles
    # (gridded, "parallel" -> megacore split on v7x).
    if B <= 256:
        pB = max(_round_up(B, SUBLANE), SUBLANE)
        tm = pB
    else:
        pB = _round_up(B, 256)
        tm = 256

    x_p = jnp.zeros((pB, P), x.dtype).at[:B, :in_channels].set(x)

    kernel = functools.partial(_fused_mlp_kernel,
                               num_hidden=num_hidden,
                               hidden_width=hidden_channels)

    out_p = pl.pallas_call(
        kernel,
        out_shape=jax.ShapeDtypeStruct((pB, P), x.dtype),
        grid_spec=pltpu.PrefetchScalarGridSpec(
            num_scalar_prefetch=0,
            grid=(pB // tm,),
            in_specs=[
                pl.BlockSpec((tm, P), lambda i: (i, 0)),          # x tile
                pl.BlockSpec(wh.shape, lambda i: (0, 0, 0)),      # all hidden W
                pl.BlockSpec(bgb.shape, lambda i: (0, 0, 0)),     # packed b/gamma/beta
                pl.BlockSpec(wf.shape, lambda i: (0, 0)),         # final W
                pl.BlockSpec(bf.shape, lambda i: (0, 0)),         # final b
            ],
            out_specs=pl.BlockSpec((tm, P), lambda i: (i, 0)),
        ),
        compiler_params=pltpu.CompilerParams(
            dimension_semantics=("parallel",)),
    )(x_p, wh, bgb, wf, bf)

    return out_p[:B, :out_channels]
    # TODO(synk): for hidden_channels >= ~2048 the full (Lh,P,P) weight block no
    # longer fits VMEM (esp. v7x 64 MiB); switch to a K/N-tiled grid with an f32
    # accumulator at that point.


# ----------------------------------------------------------------------------
# Init (mimics nn.Linear U(-1/sqrt(fan_in), 1/sqrt(fan_in)); LN gamma=1, beta=0)
# ----------------------------------------------------------------------------
def init_custom_mlp_params(key, in_channels, out_channels, hidden_channels,
                           num_layers):
    params = []
    cur = in_channels
    for _ in range(num_layers - 1):
        key, kw, kb = jax.random.split(key, 3)
        bound = 1.0 / (cur ** 0.5)
        w = jax.random.uniform(kw, (cur, hidden_channels), jnp.float32, -bound, bound)
        b = jax.random.uniform(kb, (hidden_channels,), jnp.float32, -bound, bound)
        gamma = jnp.ones((hidden_channels,), jnp.float32)
        beta = jnp.zeros((hidden_channels,), jnp.float32)
        params.append(("hidden", w, b, gamma, beta))
        cur = hidden_channels
    key, kw, kb = jax.random.split(key, 3)
    bound = 1.0 / (cur ** 0.5)
    w = jax.random.uniform(kw, (cur, out_channels), jnp.float32, -bound, bound)
    b = jax.random.uniform(kb, (out_channels,), jnp.float32, -bound, bound)
    params.append(("final", w, b))
    return params


def reference_forward(x, params):
    h = x
    for p in params:
        if p[0] == "hidden":
            _, w, b, gamma, beta = p
            y = h @ w + b
            mean = jnp.mean(y, axis=-1, keepdims=True)
            var = jnp.mean((y - mean) ** 2, axis=-1, keepdims=True)
            y = (y - mean) * lax.rsqrt(var + LN_EPS) * gamma + beta
            h = jnp.tanh(y)
        else:
            _, w, b = p
            h = h @ w + b
    return h


if __name__ == "__main__":
    in_channels, out_channels, hidden_channels, num_layers = 32, 16, 64, 3
    batch = 8

    key = jax.random.PRNGKey(0)
    key, kx = jax.random.split(key)
    x = jax.random.normal(kx, (batch, in_channels), jnp.float32)

    params = init_custom_mlp_params(key, in_channels, out_channels,
                                    hidden_channels, num_layers)
    packed = pack_params(params, in_channels, out_channels, hidden_channels)

    out = custom_mlp_forward(x, packed,
                             in_channels=in_channels,
                             out_channels=out_channels,
                             hidden_channels=hidden_channels,
                             num_hidden=num_layers - 1)
    out = jax.block_until_ready(out)

    ref = reference_forward(x, params)
    assert out.shape == (batch, out_channels)
    assert jnp.allclose(out, ref, atol=1e-5, rtol=1e-5), "mismatch vs reference"

    print("KERNEL_OK")
</pallas_src>

<mosaic_0001>
module attributes {stable_mosaic.version = 11 : i64} {
  func.func @_fused_mlp_kernel(%arg0: i32, %arg1: memref<8x128xf32, #tpu.memory_space<vmem>>, %arg2: memref<2x128x128xf32, #tpu.memory_space<vmem>>, %arg3: memref<2x8x128xf32, #tpu.memory_space<vmem>>, %arg4: memref<128x128xf32, #tpu.memory_space<vmem>>, %arg5: memref<1x128xf32, #tpu.memory_space<vmem>>, %arg6: memref<8x128xf32, #tpu.memory_space<vmem>>) attributes {dimension_semantics = [#tpu.dimension_semantics<parallel>], iteration_bounds = array<i64: 1>, scalar_prefetch = 0 : i64, scratch_operands = 0 : i64, tpu.core_type = #tpu.core_type<tc>, window_params = [{transform_indices = @transform_0, window_bounds = array<i64: 8, 128>}, {pipeline_mode = #tpu.pipeline_mode<synchronous>, transform_indices = @transform_1, window_bounds = array<i64: 2, 128, 128>}, {pipeline_mode = #tpu.pipeline_mode<synchronous>, transform_indices = @transform_2, window_bounds = array<i64: 2, 8, 128>}, {pipeline_mode = #tpu.pipeline_mode<synchronous>, transform_indices = @transform_3, window_bounds = array<i64: 128, 128>}, {pipeline_mode = #tpu.pipeline_mode<synchronous>, transform_indices = @transform_4, window_bounds = array<i64: 1, 128>}, {transform_indices = @transform_5, window_bounds = array<i64: 8, 128>}]} {
    %c0 = arith.constant 0 : index
    %c0_0 = arith.constant 0 : index
    %0 = vector.load %arg1[%c0, %c0_0] : memref<8x128xf32, #tpu.memory_space<vmem>>, vector<8x128xf32>
    %1 = tpu.iota {dimensions = array<i32: 1>} : vector<1x128xi32>
    %c64_i32 = arith.constant 64 : i32
    %2 = vector.broadcast %c64_i32 : i32 to vector<1x128xi32>
    %3 = arith.cmpi slt, %1, %2 : vector<1x128xi32>
    %4 = arith.extui %3 : vector<1x128xi1> to vector<1x128xi32>
    %5 = arith.sitofp %4 : vector<1x128xi32> to vector<1x128xf32>
    %c0_1 = arith.constant 0 : index
    %c0_2 = arith.constant 0 : index
    %c0_3 = arith.constant 0 : index
    %6 = vector.load %arg2[%c0_1, %c0_2, %c0_3] : memref<2x128x128xf32, #tpu.memory_space<vmem>>, vector<1x128x128xf32>
    %7 = vector.shape_cast %6 : vector<1x128x128xf32> to vector<128x128xf32>
    %c0_4 = arith.constant 0 : index
    %c0_5 = arith.constant 0 : index
    %c0_6 = arith.constant 0 : index
    %8 = vector.load %arg3[%c0_4, %c0_5, %c0_6] : memref<2x8x128xf32, #tpu.memory_space<vmem>>, vector<1x8x128xf32>
    %9 = vector.shape_cast %8 : vector<1x8x128xf32> to vector<8x128xf32>
    %cst = arith.constant dense<0.000000e+00> : vector<8x128xf32>
    %10 = tpu.matmul %0, %7, %cst {dimension_numbers = #tpu.dot_dimension_numbers<[1], [0], [0], [1], [0, 0, 1, 1], [], []>} : vector<8x128xf32>, vector<128x128xf32>, vector<8x128xf32> -> vector<8x128xf32>
    %11 = vector.extract_strided_slice %9 {offsets = [0, 0], sizes = [1, 128], strides = [1, 1]} : vector<8x128xf32> to vector<1x128xf32>
    %12 = vector.broadcast %11 : vector<1x128xf32> to vector<8x128xf32>
    %13 = arith.addf %10, %12 : vector<8x128xf32>
    %cst_7 = arith.constant dense<0.000000e+00> : vector<8xf32>
    %14 = vector.multi_reduction <add>, %13, %cst_7 [1] : vector<8x128xf32> to vector<8xf32>
    %15 = vector.shape_cast %14 : vector<8xf32> to vector<8x1xf32>
    %cst_8 = arith.constant 1.562500e-02 : f32
    %16 = vector.broadcast %cst_8 : f32 to vector<8x1xf32>
    %17 = arith.mulf %15, %16 : vector<8x1xf32>
    %18 = vector.broadcast %17 : vector<8x1xf32> to vector<8x128xf32>
    %19 = arith.subf %13, %18 : vector<8x128xf32>
    %20 = arith.mulf %19, %19 : vector<8x128xf32>
    %21 = vector.broadcast %5 : vector<1x128xf32> to vector<8x128xf32>
    %22 = arith.mulf %20, %21 : vector<8x128xf32>
    %cst_9 = arith.constant dense<0.000000e+00> : vector<8xf32>
    %23 = vector.multi_reduction <add>, %22, %cst_9 [1] : vector<8x128xf32> to vector<8xf32>
    %24 = vector.shape_cast %23 : vector<8xf32> to vector<8x1xf32>
    %cst_10 = arith.constant 1.562500e-02 : f32
    %25 = vector.broadcast %cst_10 : f32 to vector<8x1xf32>
    %26 = arith.mulf %24, %25 : vector<8x1xf32>
    %cst_11 = arith.constant 9.99999974E-6 : f32
    %27 = vector.broadcast %cst_11 : f32 to vector<8x1xf32>
    %28 = arith.addf %26, %27 : vector<8x1xf32>
    %29 = math.rsqrt %28 : vector<8x1xf32>
    %30 = vector.broadcast %29 : vector<8x1xf32> to vector<8x128xf32>
    %31 = arith.mulf %19, %30 : vector<8x128xf32>
    %32 = vector.extract_strided_slice %9 {offsets = [1, 0], sizes = [1, 128], strides = [1, 1]} : vector<8x128xf32> to vector<1x128xf32>
    %33 = vector.broadcast %32 : vector<1x128xf32> to vector<8x128xf32>
    %34 = arith.mulf %31, %33 : vector<8x128xf32>
    %35 = vector.extract_strided_slice %9 {offsets = [2, 0], sizes = [1, 128], strides = [1, 1]} : vector<8x128xf32> to vector<1x128xf32>
    %36 = vector.broadcast %35 : vector<1x128xf32> to vector<8x128xf32>
    %37 = arith.addf %34, %36 : vector<8x128xf32>
    %38 = math.tanh %37 : vector<8x128xf32>
    %c1 = arith.constant 1 : index
    %c0_12 = arith.constant 0 : index
    %c0_13 = arith.constant 0 : index
    %39 = vector.load %arg2[%c1, %c0_12, %c0_13] : memref<2x128x128xf32, #tpu.memory_space<vmem>>, vector<1x128x128xf32>
    %40 = vector.shape_cast %39 : vector<1x128x128xf32> to vector<128x128xf32>
    %c1_14 = arith.constant 1 : index
    %c0_15 = arith.constant 0 : index
    %c0_16 = arith.constant 0 : index
    %41 = vector.load %arg3[%c1_14, %c0_15, %c0_16] : memref<2x8x128xf32, #tpu.memory_space<vmem>>, vector<1x8x128xf32>
    %42 = vector.shape_cast %41 : vector<1x8x128xf32> to vector<8x128xf32>
    %cst_17 = arith.constant dense<0.000000e+00> : vector<8x128xf32>
    %43 = tpu.matmul %38, %40, %cst_17 {dimension_numbers = #tpu.dot_dimension_numbers<[1], [0], [0], [1], [0, 0, 1, 1], [], []>} : vector<8x128xf32>, vector<128x128xf32>, vector<8x128xf32> -> vector<8x128xf32>
    %44 = vector.extract_strided_slice %42 {offsets = [0, 0], sizes = [1, 128], strides = [1, 1]} : vector<8x128xf32> to vector<1x128xf32>
    %45 = vector.broadcast %44 : vector<1x128xf32> to vector<8x128xf32>
    %46 = arith.addf %43, %45 : vector<8x128xf32>
    %cst_18 = arith.constant dense<0.000000e+00> : vector<8xf32>
    %47 = vector.multi_reduction <add>, %46, %cst_18 [1] : vector<8x128xf32> to vector<8xf32>
    %48 = vector.shape_cast %47 : vector<8xf32> to vector<8x1xf32>
    %cst_19 = arith.constant 1.562500e-02 : f32
    %49 = vector.broadcast %cst_19 : f32 to vector<8x1xf32>
    %50 = arith.mulf %48, %49 : vector<8x1xf32>
    %51 = vector.broadcast %50 : vector<8x1xf32> to vector<8x128xf32>
    %52 = arith.subf %46, %51 : vector<8x128xf32>
    %53 = arith.mulf %52, %52 : vector<8x128xf32>
    %54 = vector.broadcast %5 : vector<1x128xf32> to vector<8x128xf32>
    %55 = arith.mulf %53, %54 : vector<8x128xf32>
    %cst_20 = arith.constant dense<0.000000e+00> : vector<8xf32>
    %56 = vector.multi_reduction <add>, %55, %cst_20 [1] : vector<8x128xf32> to vector<8xf32>
    %57 = vector.shape_cast %56 : vector<8xf32> to vector<8x1xf32>
    %cst_21 = arith.constant 1.562500e-02 : f32
    %58 = vector.broadcast %cst_21 : f32 to vector<8x1xf32>
    %59 = arith.mulf %57, %58 : vector<8x1xf32>
    %cst_22 = arith.constant 9.99999974E-6 : f32
    %60 = vector.broadcast %cst_22 : f32 to vector<8x1xf32>
    %61 = arith.addf %59, %60 : vector<8x1xf32>
    %62 = math.rsqrt %61 : vector<8x1xf32>
    %63 = vector.broadcast %62 : vector<8x1xf32> to vector<8x128xf32>
    %64 = arith.mulf %52, %63 : vector<8x128xf32>
    %65 = vector.extract_strided_slice %42 {offsets = [1, 0], sizes = [1, 128], strides = [1, 1]} : vector<8x128xf32> to vector<1x128xf32>
    %66 = vector.broadcast %65 : vector<1x128xf32> to vector<8x128xf32>
    %67 = arith.mulf %64, %66 : vector<8x128xf32>
    %68 = vector.extract_strided_slice %42 {offsets = [2, 0], sizes = [1, 128], strides = [1, 1]} : vector<8x128xf32> to vector<1x128xf32>
    %69 = vector.broadcast %68 : vector<1x128xf32> to vector<8x128xf32>
    %70 = arith.addf %67, %69 : vector<8x128xf32>
    %71 = math.tanh %70 : vector<8x128xf32>
    %c0_23 = arith.constant 0 : index
    %c0_24 = arith.constant 0 : index
    %72 = vector.load %arg4[%c0_23, %c0_24] : memref<128x128xf32, #tpu.memory_space<vmem>>, vector<128x128xf32>
    %cst_25 = arith.constant dense<0.000000e+00> : vector<8x128xf32>
    %73 = tpu.matmul %71, %72, %cst_25 {dimension_numbers = #tpu.dot_dimension_numbers<[1], [0], [0], [1], [0, 0, 1, 1], [], []>} : vector<8x128xf32>, vector<128x128xf32>, vector<8x128xf32> -> vector<8x128xf32>
    %c0_26 = arith.constant 0 : index
    %c0_27 = arith.constant 0 : index
    %74 = vector.load %arg5[%c0_26, %c0_27] : memref<1x128xf32, #tpu.memory_space<vmem>>, vector<1x128xf32>
    %75 = vector.broadcast %74 : vector<1x128xf32> to vector<8x128xf32>
    %76 = arith.addf %73, %75 : vector<8x128xf32>
    %c0_28 = arith.constant 0 : index
    %c0_29 = arith.constant 0 : index
    %77 = vector.load %arg6[%c0_28, %c0_29] : memref<8x128xf32, #tpu.memory_space<vmem>>, vector<8x128xf32>
    tpu.vector_store %arg6[%c0_28, %c0_29], %76 {strides = array<i32>} : memref<8x128xf32, #tpu.memory_space<vmem>>, vector<8x128xf32>,
    return
  }
  func.func @transform_0(%arg0: i32) -> (i32, i32) {
    %c0_i32 = arith.constant 0 : i32
    %c0_i32_0 = arith.constant 0 : i32
    return %arg0, %c0_i32 : i32, i32
  }
  func.func @transform_1(%arg0: i32) -> (i32, i32, i32) {
    %c0_i32 = arith.constant 0 : i32
    %c0_i32_0 = arith.constant 0 : i32
    %c0_i32_1 = arith.constant 0 : i32
    %c0_i32_2 = arith.constant 0 : i32
    return %c0_i32, %c0_i32_0, %c0_i32_1 : i32, i32, i32
  }
  func.func @transform_2(%arg0: i32) -> (i32, i32, i32) {
    %c0_i32 = arith.constant 0 : i32
    %c0_i32_0 = arith.constant 0 : i32
    %c0_i32_1 = arith.constant 0 : i32
    %c0_i32_2 = arith.constant 0 : i32
    return %c0_i32, %c0_i32_0, %c0_i32_1 : i32, i32, i32
  }
  func.func @transform_3(%arg0: i32) -> (i32, i32) {
    %c0_i32 = arith.constant 0 : i32
    %c0_i32_0 = arith.constant 0 : i32
    %c0_i32_1 = arith.constant 0 : i32
    return %c0_i32, %c0_i32_0 : i32, i32
  }
  func.func @transform_4(%arg0: i32) -> (i32, i32) {
    %c0_i32 = arith.constant 0 : i32
    %c0_i32_0 = arith.constant 0 : i32
    %c0_i32_1 = arith.constant 0 : i32
    return %c0_i32, %c0_i32_0 : i32, i32
  }
  func.func @transform_5(%arg0: i32) -> (i32, i32) {
    %c0_i32 = arith.constant 0 : i32
    %c0_i32_0 = arith.constant 0 : i32
    return %arg0, %c0_i32 : i32, i32
  }
}

</mosaic_0001>

<bundles_post_ra>
// kernel: custom_mlp_forward.1
= control target key start
LH: loop header
LB: loop body
LE: loop exit
PB: predicated region body
PF: predicated region fallthrough
CT: control target
= control target key end

     0   :  { %10 = vsyncpa [#allocation3], 0  ;;  %s779_s0 = inlined_call_operand.vmem [shape: f32[8,128], index: 0, kind: input, shape index: {}]   ;;  %s780_s1 = inlined_call_operand.hbm [shape: f32[2,128,128], index: 1, kind: input, shape index: {}]   ;;  %s781_s2 = inlined_call_operand.vmem [shape: f32[2,8,128], index: 2, kind: input, shape index: {}]   ;;  %s782_s3 = inlined_call_operand.hbm [shape: f32[128,128], index: 3, kind: input, shape index: {}]   ;;  %s783_s4 = inlined_call_operand.vmem [shape: f32[1,128], index: 4, kind: input, shape index: {}]   ;;  %s784_s5 = inlined_call_operand.hbm [shape: f32[8,128], index: 5, kind: output, shape index: {}]  }
   0x1   :  { %11 = vsyncpa [#allocation6], 0 }
   0x2   :  { %12 = vsyncpa [#allocation4], 0  ;;  %s635_s18 = smov [#allocation2]  }
   0x3   :  { %s20_s19 = sshll.u32 %s635_s18, 4  ;;  %s21_s19 = int_to_ptr.vmem [resolvable:$true] %s20_s19 }
   0x4   :  { %s577_s20 = scalar_lea.vmem %s21_s19, 4096  ;;  %p582_p1 = scmp.lt.s32.totalorder %s21_s19, %s21_s19 }
   0x5   :  { %p578_p0 = scmp.ne.s32.totalorder %s21_s19, %s577_s20  ;;  %p583_p2 = scmp.lt.s32.totalorder %s577_s20, %s577_s20 }
   0x7   :  { %p584_p3 = por %p583_p2, %p582_p1 }
   0x9   :  { %p585_p4 = pnand %p584_p3, %p578_p0 }
   0xb   :  { %588 = shalt.err (!%p585_p4)
}
   0xc   :  { %s636_s21 = smov 128   ;;  %s637_s22 = smov 8  }
   0xd   :  { %26 = dma.hbm_to_vmem [thread:$0]  %s780_s1, 4096, %s21_s19, [#allocation3], %s636_s21, %s636_s21, %s637_s22  }
   0xe   :  { %s638_s25 = smov [#allocation5]  }
   0xf   :  { %s34_s26 = sshll.u32 %s638_s25, 4  ;;  %s35_s26 = int_to_ptr.vmem [resolvable:$true] %s34_s26 }
  0x10   :  { %s597_s27 = scalar_lea.vmem %s35_s26, 2048  ;;  %p602_p6 = scmp.lt.s32.totalorder %s35_s26, %s35_s26 }
  0x11   :  { %p598_p5 = scmp.ne.s32.totalorder %s35_s26, %s597_s27  ;;  %p603_p7 = scmp.lt.s32.totalorder %s597_s27, %s597_s27 }
  0x13   :  { %p604_p8 = por %p603_p7, %p602_p6 }
  0x15   :  { %p605_p9 = pnand %p604_p8, %p598_p5 }
  0x17   :  { %608 = shalt.err (!%p605_p9)
}
  0x18   :  { %40 = dma.hbm_to_vmem [thread:$0]  %s782_s3, 2048, %s35_s26, [#allocation6], %s636_s21, %s636_s21, %s637_s22  }
  0x19   :  { %629 = dma.done.wait [#allocation3], 4096  }
  0x1a   :  { %630 = vsyncadd [#allocation3], 4294963200 }
  0x1b   :  { %631 = dma.done.wait [#allocation6], 2048  }
  0x1c   :  { %632 = vsyncadd [#allocation6], 4294965248  ;;  %v639_v0 = vmov 0.0   ;;  %vm640_vm0 = vmmov 0   ;;  %v70_v1 = vld [vmem:[#allocation2 + $0x78] sm:$0xff]  ;;  %v69_v2 = vld [vmem:[#allocation2 + $0x70] sm:$0xff]  ;;  %v50_v18 = vlaneseq }
  0x1d   :  { %449 = vmatprep.subr.mxu0 %v639_v0  ;;  %481 = vmatprep.mubr.msk.f32.mxu0 %vm640_vm0, %v639_v0  ;;  %v68_v3 = vld [vmem:[#allocation2 + $0x68] sm:$0xff]  ;;  %v67_v4 = vld [vmem:[#allocation2 + $0x60] sm:$0xff]  ;;  %v66_v5 = vld [vmem:[#allocation2 + $0x58] sm:$0xff]  ;;  %s641_s9 = smov [#allocation7]  }
  0x1e   :  { %484 = vmatprep.subr.mxu1 %v639_v0  ;;  %516 = vmatprep.mubr.msk.f32.mxu1 %vm640_vm0, %v639_v0  ;;  %v65_v6 = vld [vmem:[#allocation2 + $0x50] sm:$0xff]  ;;  %v64_v7 = vld [vmem:[#allocation2 + $0x48] sm:$0xff]  ;;  %v63_v8 = vld [vmem:[#allocation2 + $0x40] sm:$0xff]  ;;  %v705_v19 = vshrl.u32 %v50_v18, 7  ;;  %v51_v26 = vand.u32 127, %v50_v18  ;;  %s385_s10 = sshll.u32 %s641_s9, 4  ;;  %s386_s10 = int_to_ptr.vmem [resolvable:$true] %s385_s10 }
  0x1f   :  { %450 = vmatpush3.msra.mxu0 %v70_v1  ;;  %v62_v9 = vld [vmem:[#allocation2 + $0x38] sm:$0xff]  ;;  %v61_v10 = vld [vmem:[#allocation2 + $0x30] sm:$0xff]  ;;  %v60_v11 = vld [vmem:[#allocation2 + $0x28] sm:$0xff]  ;;  %s609_s11 = scalar_lea.vmem %s386_s10, 128  ;;  %p614_p11 = scmp.lt.s32.totalorder %s386_s10, %s386_s10 }
  0x20   :  { %451 = vmatprep.subr.mxu0 %v639_v0  ;;  %v59_v12 = vld [vmem:[#allocation2 + $0x20] sm:$0xff]  ;;  %v58_v13 = vld [vmem:[#allocation2 + $0x18] sm:$0xff]  ;;  %v57_v14 = vld [vmem:[#allocation2 + $0x10] sm:$0xff]  ;;  %v74_v20 = vsub.s32 0, %v705_v19  ;;  %vm52_vm1 = vcmp.lt.s32.totalorder %v51_v26, 64  ;;  %v160_v52 = vsub.s32 1, %v705_v19  ;;  %p610_p10 = scmp.ne.s32.totalorder %s386_s10, %s609_s11  ;;  %p615_p12 = scmp.lt.s32.totalorder %s609_s11, %s609_s11 }
  0x21   :  { %452 = vmatpush3.msra.mxu0 %v69_v2  ;;  %v56_v15 = vld [vmem:[#allocation2 + $0x8] sm:$0xff]  ;;  %v55_v16 = vld [vmem:[#allocation2] sm:$0xff]  ;;  %v717_v30 = vsel %vm52_vm1, 1.0, %v639_v0  ;;  %v185_v33 = vld [vmem:[#allocation2 + $0xf8] sm:$0xff]  ;;  %v165_v53 = vsub.s32 2, %v705_v19 }
  0x22   :  { %453 = vmatprep.subr.mxu0 %v639_v0  ;;  %v49_v17 = vld [vmem:[%s779_s0] sm:$0xff]  ;;  %485 = vmatpush3.msra.mxu1 %v185_v33  ;;  %v184_v34 = vld [vmem:[#allocation2 + $0xf0] sm:$0xff]  ;;  %v183_v35 = vld [vmem:[#allocation2 + $0xe8] sm:$0xff]  ;;  %p616_p13 = por %p615_p12, %p614_p11 }
  0x23   :  { %454 = vmatpush3.msra.mxu0 %v68_v3  ;;  %v711_v21 = vld [vmem:[%s781_s2] sm:$0xff]  ;;  %486 = vmatprep.subr.mxu1 %v639_v0  ;;  %v181_v37 = vld [vmem:[#allocation2 + $0xd8] sm:$0xff]  ;;  %v180_v38 = vld [vmem:[#allocation2 + $0xd0] sm:$0xff] }
  0x24   :  { %455 = vmatprep.subr.mxu0 %v639_v0  ;;  %v75_v22 = vrot.slane %v711_v21, %v74_v20  ;;  %487 = vmatpush3.msra.mxu1 %v184_v34  ;;  %v182_v36 = vld [vmem:[#allocation2 + $0xe0] sm:$0xff]  ;;  %v179_v39 = vld [vmem:[#allocation2 + $0xc8] sm:$0xff]  ;;  %v177_v41 = vld [vmem:[#allocation2 + $0xb8] sm:$0xff]  ;;  %v161_v54 = vrot.slane %v711_v21, %v160_v52  ;;  %v166_v56 = vrot.slane %v711_v21, %v165_v53  ;;  %p617_p0 = pnand %p616_p13, %p610_p10 }
  0x25   :  { %456 = vmatpush3.msra.mxu0 %v67_v4  ;;  %488 = vmatprep.subr.mxu1 %v639_v0  ;;  %v178_v40 = vld [vmem:[#allocation2 + $0xc0] sm:$0xff]  ;;  %v176_v42 = vld [vmem:[#allocation2 + $0xb0] sm:$0xff]  ;;  %v175_v43 = vld [vmem:[#allocation2 + $0xa8] sm:$0xff] }
  0x26   :  { %457 = vmatprep.subr.mxu0 %v639_v0  ;;  %489 = vmatpush3.msra.mxu1 %v183_v35  ;;  %v174_v44 = vld [vmem:[#allocation2 + $0xa0] sm:$0xff]  ;;  %v173_v45 = vld [vmem:[#allocation2 + $0x98] sm:$0xff]  ;;  %v172_v46 = vld [vmem:[#allocation2 + $0x90] sm:$0xff] }
  0x27   :  { %458 = vmatpush3.msra.mxu0 %v66_v5  ;;  %490 = vmatprep.subr.mxu1 %v639_v0  ;;  %v171_v47 = vld [vmem:[#allocation2 + $0x88] sm:$0xff]  ;;  %v170_v48 = vld [vmem:[#allocation2 + $0x80] sm:$0xff]  ;;  %v288_v21 = vld [vmem:[#allocation5 + $0x18] sm:$0xff] }
  0x28   :  { %459 = vmatprep.subr.mxu0 %v639_v0  ;;  %491 = vmatpush3.msra.mxu1 %v182_v36  ;;  %v746_v61 = vld [vmem:[%s781_s2 + $0x8] sm:$0xff] }
  0x29   :  { %460 = vmatpush3.msra.mxu0 %v65_v6  ;;  %492 = vmatprep.subr.mxu1 %v639_v0  ;;  %v191_v62 = vrot.slane %v746_v61, %v74_v20  ;;  %v290_v18 = vld [vmem:[#allocation5 + $0x28] sm:$0xff]  ;;  %v289_v20 = vld [vmem:[#allocation5 + $0x20] sm:$0xff] }
  0x2a   :  { %461 = vmatprep.subr.mxu0 %v639_v0  ;;  %493 = vmatpush3.msra.mxu1 %v181_v37 }
  0x2b   :  { %462 = vmatpush3.msra.mxu0 %v64_v7  ;;  %494 = vmatprep.subr.mxu1 %v639_v0 }
  0x2c   :  { %463 = vmatprep.subr.mxu0 %v639_v0  ;;  %495 = vmatpush3.msra.mxu1 %v180_v38 }
  0x2d   :  { %464 = vmatpush3.msra.mxu0 %v63_v8  ;;  %496 = vmatprep.subr.mxu1 %v639_v0  ;;  %v300_v8 = vld [vmem:[#allocation5 + $0x78] sm:$0xff] }
  0x2e   :  { %465 = vmatprep.subr.mxu0 %v639_v0  ;;  %497 = vmatpush3.msra.mxu1 %v179_v39 }
  0x2f   :  { %466 = vmatpush3.msra.mxu0 %v62_v9  ;;  %498 = vmatprep.subr.mxu1 %v639_v0  ;;  %v299_v9 = vld [vmem:[#allocation5 + $0x70] sm:$0xff] }
  0x30   :  { %467 = vmatprep.subr.mxu0 %v639_v0  ;;  %499 = vmatpush3.msra.mxu1 %v178_v40 }
  0x31   :  { %468 = vmatpush3.msra.mxu0 %v61_v10  ;;  %500 = vmatprep.subr.mxu1 %v639_v0  ;;  %v298_v10 = vld [vmem:[#allocation5 + $0x68] sm:$0xff] }
  0x32   :  { %469 = vmatprep.subr.mxu0 %v639_v0  ;;  %501 = vmatpush3.msra.mxu1 %v177_v41 }
  0x33   :  { %470 = vmatpush3.msra.mxu0 %v60_v11  ;;  %502 = vmatprep.subr.mxu1 %v639_v0  ;;  %v297_v11 = vld [vmem:[#allocation5 + $0x60] sm:$0xff] }
  0x34   :  { %471 = vmatprep.subr.mxu0 %v639_v0  ;;  %503 = vmatpush3.msra.mxu1 %v176_v42 }
  0x35   :  { %472 = vmatpush3.msra.mxu0 %v59_v12  ;;  %504 = vmatprep.subr.mxu1 %v639_v0  ;;  %v296_v12 = vld [vmem:[#allocation5 + $0x58] sm:$0xff] }
  0x36   :  { %473 = vmatprep.subr.mxu0 %v639_v0  ;;  %505 = vmatpush3.msra.mxu1 %v175_v43 }
  0x37   :  { %474 = vmatpush3.msra.mxu0 %v58_v13  ;;  %506 = vmatprep.subr.mxu1 %v639_v0  ;;  %v295_v13 = vld [vmem:[#allocation5 + $0x50] sm:$0xff] }
  0x38   :  { %475 = vmatprep.subr.mxu0 %v639_v0  ;;  %507 = vmatpush3.msra.mxu1 %v174_v44 }
  0x39   :  { %476 = vmatpush3.msra.mxu0 %v57_v14  ;;  %508 = vmatprep.subr.mxu1 %v639_v0  ;;  %v294_v14 = vld [vmem:[#allocation5 + $0x48] sm:$0xff] }
  0x3a   :  { %477 = vmatprep.subr.mxu0 %v639_v0  ;;  %509 = vmatpush3.msra.mxu1 %v173_v45 }
  0x3b   :  { %478 = vmatpush3.msra.mxu0 %v56_v15  ;;  %510 = vmatprep.subr.mxu1 %v639_v0  ;;  %v293_v15 = vld [vmem:[#allocation5 + $0x40] sm:$0xff] }
  0x3c   :  { %479 = vmatprep.subr.mxu0 %v639_v0  ;;  %511 = vmatpush3.msra.mxu1 %v172_v46 }
  0x3d   :  { %480 = vmatpush3.msra.mxu0 %v55_v16  ;;  %512 = vmatprep.subr.mxu1 %v639_v0  ;;  %v292_v16 = vld [vmem:[#allocation5 + $0x38] sm:$0xff] }
  0x3e   :  { %482 = vmatmul.mubr.f32.vlgmr.msra.gmra.mxu0 %v49_v17  ;;  %519 = vmatprep.subr.mxu0 %v639_v0  ;;  %v291_v17 = vld [vmem:[#allocation5 + $0x30] sm:$0xff] }
  0x3f   :  { %551 = vmatprep.mubr.msk.f32.mxu0 %vm640_vm0, %v639_v0  ;;  %513 = vmatpush3.msra.mxu1 %v171_v47 }
  0x40   :  { %514 = vmatprep.subr.mxu1 %v639_v0  ;;  %520 = vmatpush3.msra.mxu0 %v300_v8 }
  0x41   :  { %515 = vmatpush3.msra.mxu1 %v170_v48  ;;  %521 = vmatprep.subr.mxu0 %v639_v0 }
  0x42   :  { %522 = vmatpush3.msra.mxu0 %v299_v9 }
  0x43   :  { %523 = vmatprep.subr.mxu0 %v639_v0 }
  0x44   :  { %524 = vmatpush3.msra.mxu0 %v298_v10 }
  0x45   :  { %525 = vmatprep.subr.mxu0 %v639_v0 }
  0x46   :  { %526 = vmatpush3.msra.mxu0 %v297_v11 }
  0x47   :  { %527 = vmatprep.subr.mxu0 %v639_v0 }
  0x48   :  { %528 = vmatpush3.msra.mxu0 %v296_v12 }
  0x49   :  { %529 = vmatprep.subr.mxu0 %v639_v0 }
  0x4a   :  { %530 = vmatpush3.msra.mxu0 %v295_v13 }
  0x4b   :  { %531 = vmatprep.subr.mxu0 %v639_v0 }
  0x4c   :  { %532 = vmatpush3.msra.mxu0 %v294_v14 }
  0x4d   :  { %533 = vmatprep.subr.mxu0 %v639_v0 }
  0x4e   :  { %534 = vmatpush3.msra.mxu0 %v293_v15 }
  0x4f   :  { %535 = vmatprep.subr.mxu0 %v639_v0 }
  0x50   :  { %536 = vmatpush3.msra.mxu0 %v292_v16 }
  0x51   :  { %537 = vmatprep.subr.mxu0 %v639_v0 }
  0x52   :  { %538 = vmatpush3.msra.mxu0 %v291_v17 }
  0x53   :  { %539 = vmatprep.subr.mxu0 %v639_v0 }
  0x54   :  { %540 = vmatpush3.msra.mxu0 %v290_v18 }
  0x55   :  { %541 = vmatprep.subr.mxu0 %v639_v0 }
  0x56   :  { %542 = vmatpush3.msra.mxu0 %v289_v20 }
  0x57   :  { %543 = vmatprep.subr.mxu0 %v639_v0 }
  0x58   :  { %544 = vmatpush3.msra.mxu0 %v288_v21 }
  0x59   :  { %545 = vmatprep.subr.mxu0 %v639_v0 }
  0xfe   :  { %v142_v23 = vpop.f32.mrf.mxu0 }
  0xff   :  { %v143_v24 = vadd.f32 %v142_v23, %v75_v22  ;;  %v287_v22 = vld [vmem:[#allocation5 + $0x10] sm:$0xff]  ;;  %v286_v23 = vld [vmem:[#allocation5 + $0x8] sm:$0xff] }
 0x100   :  { %v483_v25 = vpop.f32.mrf.mxu0  ;;  %546 = vmatpush3.msra.mxu0 %v287_v22 }
 0x101   :  { %146 = vadd.xlane.f32.xlu0 %v143_v24  ;;  %547 = vmatprep.subr.mxu0 %v639_v0 }
 0x102   :  { %548 = vmatpush3.msra.mxu0 %v286_v23 }
 0x103   :  { %549 = vmatprep.subr.mxu0 %v639_v0  ;;  %v397_v0 = vld [vmem:[%s783_s4] ss:$0 sm:$0xff] }
 0x18a   :  { %v147_v27 = vpop.xlane.xlu0 %146 }
 0x18b   :  { %v148_v28 = vmul.f32 0.015625, %v147_v27 }
 0x18d   :  { %v149_v29 = vsub.f32 %v143_v24, %v148_v28  ;;  %v285_v24 = vld [vmem:[#allocation5] sm:$0xff]  ;;  %v277_v28 = vrot.slane %v746_v61, %v160_v52 }
 0x18e   :  { %550 = vmatpush3.msra.mxu0 %v285_v24 }
 0x18f   :  { %v150_v31 = vmul.f32 %v149_v29, %v149_v29 }
 0x191   :  { %v151_v32 = vmul.f32 %v717_v30, %v150_v31 }
 0x193   :  { %152 = vadd.xlane.f32.xlu0 %v151_v32 }
 0x21c   :  { %v153_v49 = vpop.xlane.xlu0 %152 }
 0x21d   :  { %v154_v50 = vmul.f32 0.015625, %v153_v49 }
 0x21f   :  { %v155_v51 = vadd.f32 1e-05, %v154_v50 }
 0x221   :  { %561 = vrsqrt.f32 %v155_v51 }
 0x22e   :  { %v562_v55 = vpop.eup %561 }
 0x22f   :  { %v157_v57 = vmul.f32 %v562_v55, %v149_v29 }
 0x231   :  { %v162_v58 = vmul.f32 %v161_v54, %v157_v57 }
 0x233   :  { %v167_v59 = vadd.f32 %v166_v56, %v162_v58 }
 0x235   :  { %563 = vtanh.f32 %v167_v59 }
 0x242   :  { %v564_v60 = vpop.eup %563 }
 0x243   :  { %517 = vmatmul.mubr.f32.vlgmr.msra.gmra.mxu1 %v564_v60 }
 0x303   :  { %v258_v63 = vpop.f32.mrf.mxu1 }
 0x304   :  { %v259_v1 = vadd.f32 %v258_v63, %v191_v62 }
 0x305   :  { %v518_v2 = vpop.f32.mrf.mxu1 }
 0x306   :  { %262 = vadd.xlane.f32.xlu1 %v259_v1 }
 0x38f   :  { %v263_v3 = vpop.xlane.xlu1 %262 }
 0x390   :  { %v264_v4 = vmul.f32 0.015625, %v263_v3 }
 0x392   :  { %v265_v5 = vsub.f32 %v259_v1, %v264_v4 }
 0x394   :  { %v266_v6 = vmul.f32 %v265_v5, %v265_v5 }
 0x396   :  { %v267_v7 = vmul.f32 %v717_v30, %v266_v6  ;;  %v282_v30 = vrot.slane %v746_v61, %v165_v53 }
 0x398   :  { %268 = vadd.xlane.f32.xlu1 %v267_v7 }
 0x421   :  { %v269_v25 = vpop.xlane.xlu1 %268 }
 0x422   :  { %v270_v26 = vmul.f32 0.015625, %v269_v25 }
 0x424   :  { %v271_v27 = vadd.f32 1e-05, %v270_v26 }
 0x426   :  { %565 = vrsqrt.f32 %v271_v27 }
 0x433   :  { %v566_v29 = vpop.eup %565 }
 0x434   :  { %v273_v31 = vmul.f32 %v566_v29, %v265_v5 }
 0x436   :  { %v278_v32 = vmul.f32 %v277_v28, %v273_v31 }
 0x438   :  { %v283_v33 = vadd.f32 %v282_v30, %v278_v32 }
 0x43a   :  { %567 = vtanh.f32 %v283_v33 }
 0x447   :  { %v568_v34 = vpop.eup %567 }
 0x448   :  { %552 = vmatmul.mubr.f32.vlgmr.msra.gmra.mxu0 %v568_v34 }
 0x508   :  { %v374_v35 = vpop.f32.mrf.mxu0 }
 0x509   :  { %v375_v36 = vadd.f32 %v397_v0, %v374_v35 }
 0x50a   :  { %v553_v37 = vpop.f32.mrf.mxu0 }
 0x50b   :  { %378 = vst [vmem:[#allocation7] sm:$0xff] %v375_v36 }
 0x50c   :  { %620 = shalt.err (!%p617_p0)
}
 0x50d   :  { %388 = dma.vmem_to_hbm [thread:$0]  %s386_s10, 128, %s784_s5, [#allocation4]  }
 0x50e   :  { %633 = dma.done.wait [#allocation4], 128  }
 0x50f   :  { %634 = vsyncadd [#allocation4], 4294967168 }
 0x510   :  { %392 = vsyncpa [#allocation3], 1 }
 0x511   :  { %393 = vsyncpa [#allocation6], 1 }
 0x512   :  { %394 = vsyncpa [#allocation4], 1 }

</bundles_post_ra>
